<compile_context>
chip_gen: v5e
topology: v5e:2x2
jax: 0.10.0
libtpu: 0.0.40
codegen_flags: <defaults>
</compile_context>

<pallas_src>
import functools

import numpy as np
import jax
import jax.numpy as jnp
from jax import lax
from jax.experimental import pallas as pl
from jax.experimental.pallas import tpu as pltpu


# ----------------------------------------------------------------------------
# Pallas kernel: whole sequence per batch block, h carried as a fori_loop value
# ----------------------------------------------------------------------------
def _ode_gru_kernel(steps_ref,      # SMEM int32 (T,)  -- #Euler sub-steps before obs t
                    gi_ref,         # VMEM (T, Bb, 3H) precomputed x @ W_ih^T + b_ih
                    w_rz_ref,       # VMEM (H, 2H)  [W_hr^T | W_hz^T] of FullGRUODECell
                    w_hh_ode_ref,   # VMEM (H, H)   W_hh^T of FullGRUODECell
                    w_hh_ref,       # VMEM (H, 3H)  GRU weight_hh^T (r|z|n order)
                    b_hh_ref,       # VMEM (1, 3H)
                    out_ref,        # VMEM (T, Bb, H) hidden state after each observation
                    *, delta_t, n_steps_static):
    hdim = w_hh_ode_ref.shape[0]
    tdim = gi_ref.shape[0]
    bdim = gi_ref.shape[1]

    # Hoist weight loads out of the time loop (no per-step re-reads).
    w_rz = w_rz_ref[...]
    w_hh_ode = w_hh_ode_ref[...]
    w_hh = w_hh_ref[...]
    b_hh = b_hh_ref[...]

    def ode_body(_, h):
        # FullGRUODECell_Autonomous: dh = (1 - z) * (tanh((r*h) W_hh) - h)
        rz = jax.nn.sigmoid(jnp.dot(h, w_rz, preferred_element_type=jnp.float32))
        r = rz[:, :hdim]
        z = rz[:, hdim:]
        u = jnp.tanh(jnp.dot(r * h, w_hh_ode, preferred_element_type=jnp.float32))
        return h + delta_t * (1.0 - z) * (u - h)

    def time_body(t, h):
        # ---- Euler ODE evolution up to observation t
        if n_steps_static is not None:
            if n_steps_static > 0:
                h = lax.fori_loop(0, n_steps_static, ode_body, h,
                                  unroll=(n_steps_static <= 8))
        else:
            h = lax.fori_loop(0, steps_ref[t], ode_body, h)

        # ---- one torch.nn.GRU cell step (input gates precomputed outside)
        gi = gi_ref[t]                                                   # (Bb, 3H)
        gh = jnp.dot(h, w_hh, preferred_element_type=jnp.float32) + b_hh
        r = jax.nn.sigmoid(gi[:, :hdim] + gh[:, :hdim])
        z = jax.nn.sigmoid(gi[:, hdim:2 * hdim] + gh[:, hdim:2 * hdim])
        n = jnp.tanh(gi[:, 2 * hdim:] + r * gh[:, 2 * hdim:])
        h_new = (1.0 - z) * n + z * h

        out_ref[t] = h_new.astype(out_ref.dtype)                         # VMEM store
        return h_new

    h0 = jnp.zeros((bdim, hdim), jnp.float32)
    lax.fori_loop(0, tdim, time_body, h0)


# ----------------------------------------------------------------------------
# Wrapper (glue: step counting, gate-precompute, layout, rec_linear)
# ----------------------------------------------------------------------------
def _count_euler_steps(t_row, delta_t):
    """Faithfully replicate the python while-loop of Last_ODENetwork.forward."""
    steps = []
    cur = float(t_row[0]) - 1.0
    for obs in t_row:
        obs = float(obs)
        n = 0
        while cur < obs - 0.001 * delta_t:
            cur += delta_t
            n += 1
        steps.append(n)
    return np.asarray(steps, dtype=np.int32)


def last_ode_network_forward(H, times, params, delta_t):
    """H: (B, T, D) float32, times: (B, T) float32.  Returns X_tilde: (B, T, Dout)."""
    B, T, D = H.shape
    hidden = params["w_hh"].shape[1]       # == D (required by the torch module)
    delta_t = float(delta_t)

    # --- per-observation Euler sub-step counts (times[0] only, like the module) --
    try:
        t_row = np.asarray(times)[0]
        concrete = True
    except Exception:                      # times is traced (inside jit)
        concrete = False

    if concrete:
        steps_np = _count_euler_steps(t_row, delta_t)
        steps = jnp.asarray(steps_np)
        uniform = bool(np.all(steps_np == steps_np[0]))
        n_static = int(steps_np[0]) if uniform else None
    else:
        # analytic fallback (cumulative ceil of elapsed time / delta_t)
        tr = times[0].astype(jnp.float32)
        t0 = tr[0] - 1.0
        cum = jnp.ceil((tr - 0.001 * delta_t - t0) / delta_t)
        cum = lax.cummax(jnp.maximum(cum, 0.0), axis=0).astype(jnp.int32)
        steps = jnp.concatenate([cum[:1], cum[1:] - cum[:-1]])
        n_static = None

    # --- hoist the h-independent GRU input projection off the serial path -------
    # gi[t, b, :] = H[b, t, :] @ W_ih^T + b_ih  (one batched matmul, transpose fused)
    gi_k = (jnp.einsum('btd,gd->tbg', H.astype(jnp.float32),
                       params["w_ih"].astype(jnp.float32))
            + params["b_ih"].astype(jnp.float32)[None, None, :])         # (T, B, 3H)

    # --- kernel-layout recurrent weights ----------------------------------------
    w_rz = jnp.concatenate([params["w_hr_ode"].T, params["w_hz_ode"].T],
                           axis=1).astype(jnp.float32)                   # (H, 2H)
    w_hh_ode = params["w_hh_ode"].T.astype(jnp.float32)                  # (H, H)
    w_hh_t = params["w_hh"].T.astype(jnp.float32)                        # (H, 3H)
    b_hh = params["b_hh"].astype(jnp.float32).reshape(1, 3 * hidden)

    # Batch tiling: normally one VMEM-resident block; when B is a multiple of 16
    # split into two parallel blocks so v7x's second TensorCore gets work.
    block_b = B // 2 if (B % 16 == 0) else B
    nb = B // block_b

    full = lambda shape: pl.BlockSpec(shape, lambda b, s: (0,) * len(shape))

    h_seq = pl.pallas_call(
        functools.partial(_ode_gru_kernel, delta_t=delta_t, n_steps_static=n_static),
        out_shape=jax.ShapeDtypeStruct((T, B, hidden), jnp.float32),
        grid_spec=pltpu.PrefetchScalarGridSpec(
            num_scalar_prefetch=1,
            grid=(nb,),
            in_specs=[
                pl.BlockSpec((T, block_b, 3 * hidden), lambda b, s: (0, b, 0)),  # gi
                full((hidden, 2 * hidden)),                                      # w_rz
                full((hidden, hidden)),                                          # w_hh_ode
                full((hidden, 3 * hidden)),                                      # w_hh^T
                full((1, 3 * hidden)),                                           # b_hh
            ],
            out_specs=pl.BlockSpec((T, block_b, hidden), lambda b, s: (0, b, 0)),
            scratch_shapes=[],
        ),
        compiler_params=pltpu.CompilerParams(dimension_semantics=("parallel",)),
    )(steps, gi_k, w_rz, w_hh_ode, w_hh_t, b_hh)
    # TODO(synk): for very long sequences / large hidden sizes (T*B*3H activations or
    # ~9*H^2 weight bytes approaching the VMEM budget, esp. v7x's 64 MiB), re-introduce
    # a time-tiled grid and single-buffered (pl.Buffered(1)) / bf16 weight specs.

    # --- rec_linear (identity last_activation), fused with the (T,B)->(B,T) transpose
    x_tilde = (jnp.einsum('tbh,oh->bto', h_seq,
                          params["w_rec"].astype(jnp.float32))
               + params["b_rec"].astype(jnp.float32)[None, None, :])
    # TODO(synk): non-identity last_activation ('softplus'/'tanh'/'sigmoid') would be a
    # one-line elementwise here; constructor default 'identity' is used.
    return x_tilde


# ----------------------------------------------------------------------------
# Pure-JAX reference (faithful re-implementation of the torch forward)
# ----------------------------------------------------------------------------
def _gru_ode_cell(h, p):
    r = jax.nn.sigmoid(h @ p["w_hr_ode"].T)
    z = jax.nn.sigmoid(h @ p["w_hz_ode"].T)
    u = jnp.tanh((r * h) @ p["w_hh_ode"].T)
    return (1.0 - z) * (u - h)


def _gru_obs_step(x, h, p):
    Hd = h.shape[1]
    gi = x @ p["w_ih"].T + p["b_ih"]
    gh = h @ p["w_hh"].T + p["b_hh"]
    r = jax.nn.sigmoid(gi[:, :Hd] + gh[:, :Hd])
    z = jax.nn.sigmoid(gi[:, Hd:2 * Hd] + gh[:, Hd:2 * Hd])
    n = jnp.tanh(gi[:, 2 * Hd:] + r * gh[:, 2 * Hd:])
    return (1.0 - z) * n + z * h


def reference_forward(H, times, params, delta_t):
    B, T, D = H.shape
    hidden = params["w_hh"].shape[1]
    h = jnp.zeros((B, hidden), jnp.float32)
    times_np = np.asarray(times)
    current_time = float(times_np[0, 0]) - 1.0
    outs = []
    for idx in range(T):
        obs_time = float(times_np[0, idx])
        while current_time < obs_time - 0.001 * delta_t:
            h = h + delta_t * _gru_ode_cell(h, params)
            current_time += delta_t
        h = _gru_obs_step(H[:, idx, :], h, params)
        outs.append(h)
    out = jnp.stack(outs, axis=1)                               # (B, T, hidden==D)
    return out @ params["w_rec"].T + params["b_rec"]            # identity last act


# ----------------------------------------------------------------------------
def init_params(key, input_size, hidden_size, output_size, gru_input_size):
    ks = jax.random.split(key, 9)
    u = lambda k, shape, fan: jax.random.uniform(
        k, shape, jnp.float32, -1.0 / jnp.sqrt(fan), 1.0 / jnp.sqrt(fan))
    return {
        # FullGRUODECell_Autonomous (bias=False linears)
        "w_hr_ode": u(ks[0], (hidden_size, hidden_size), hidden_size),
        "w_hz_ode": u(ks[1], (hidden_size, hidden_size), hidden_size),
        "w_hh_ode": u(ks[2], (hidden_size, hidden_size), hidden_size),
        # torch.nn.GRU(gru_input_size, hidden_size), single layer, gate order r|z|n
        "w_ih": u(ks[3], (3 * hidden_size, gru_input_size), hidden_size),
        "w_hh": u(ks[4], (3 * hidden_size, hidden_size), hidden_size),
        "b_ih": u(ks[5], (3 * hidden_size,), hidden_size),
        "b_hh": u(ks[6], (3 * hidden_size,), hidden_size),
        # rec_linear: Linear(gru_input_size, output_size)
        "w_rec": u(ks[7], (output_size, gru_input_size), gru_input_size),
        "b_rec": u(ks[8], (output_size,), gru_input_size),
    }


if __name__ == "__main__":
    # hidden_size must equal gru_input_size (the torch code adds the (B, hidden)
    # GRU output into out[:, idx, :] of width gru_input_size).
    B, T = 4, 8
    hidden_size = gru_input_size = input_size = 32
    output_size = 16
    delta_t = 0.25

    key = jax.random.PRNGKey(0)
    k_p, k_h = jax.random.split(key)
    params = init_params(k_p, input_size, hidden_size, output_size, gru_input_size)

    H = jax.random.normal(k_h, (B, T, gru_input_size), jnp.float32)

    # 1) uniform observation grid -> static, unrolled Euler sub-steps in-kernel
    times = jnp.broadcast_to(jnp.arange(T, dtype=jnp.float32), (B, T))
    out = jax.block_until_ready(last_ode_network_forward(H, times, params, delta_t))
    ref = reference_forward(H, times, params, delta_t)
    assert out.shape == (B, T, output_size)
    assert jnp.allclose(out, ref, atol=1e-4, rtol=1e-4), (
        f"max abs err (uniform) {jnp.max(jnp.abs(out - ref))}")

    # 2) irregular observation grid -> dynamic step counts via SMEM scalar prefetch
    times_irreg = jnp.broadcast_to(
        jnp.array([0.0, 0.3, 1.1, 1.2, 2.5, 2.6, 4.0, 4.1], jnp.float32), (B, T))
    out2 = jax.block_until_ready(
        last_ode_network_forward(H, times_irreg, params, delta_t))
    ref2 = reference_forward(H, times_irreg, params, delta_t)
    assert jnp.allclose(out2, ref2, atol=1e-4, rtol=1e-4), (
        f"max abs err (irregular) {jnp.max(jnp.abs(out2 - ref2))}")

    print("KERNEL_OK")
</pallas_src>

<mosaic_0001>
module attributes {stable_mosaic.version = 11 : i64} {
  func.func @_ode_gru_kernel(%arg0: i32, %arg1: memref<8xi32, #tpu.memory_space<smem>>, %arg2: memref<8x4x96xf32, #tpu.memory_space<vmem>>, %arg3: memref<32x64xf32, #tpu.memory_space<vmem>>, %arg4: memref<32x32xf32, #tpu.memory_space<vmem>>, %arg5: memref<32x96xf32, #tpu.memory_space<vmem>>, %arg6: memref<1x96xf32, #tpu.memory_space<vmem>>, %arg7: memref<8x4x32xf32, #tpu.memory_space<vmem>>) attributes {dimension_semantics = [#tpu.dimension_semantics<parallel>], iteration_bounds = array<i64: 1>, scalar_prefetch = 1 : i64, scratch_operands = 0 : i64, tpu.core_type = #tpu.core_type<tc>, window_params = [{transform_indices = @transform_0, window_bounds = array<i64: 8, 4, 96>}, {pipeline_mode = #tpu.pipeline_mode<synchronous>, transform_indices = @transform_1, window_bounds = array<i64: 32, 64>}, {pipeline_mode = #tpu.pipeline_mode<synchronous>, transform_indices = @transform_2, window_bounds = array<i64: 32, 32>}, {pipeline_mode = #tpu.pipeline_mode<synchronous>, transform_indices = @transform_3, window_bounds = array<i64: 32, 96>}, {pipeline_mode = #tpu.pipeline_mode<synchronous>, transform_indices = @transform_4, window_bounds = array<i64: 1, 96>}, {transform_indices = @transform_5, window_bounds = array<i64: 8, 4, 32>}]} {
    %c0 = arith.constant 0 : index
    %c0_0 = arith.constant 0 : index
    %0 = vector.load %arg3[%c0, %c0_0] : memref<32x64xf32, #tpu.memory_space<vmem>>, vector<32x64xf32>
    %c0_1 = arith.constant 0 : index
    %c0_2 = arith.constant 0 : index
    %1 = vector.load %arg4[%c0_1, %c0_2] : memref<32x32xf32, #tpu.memory_space<vmem>>, vector<32x32xf32>
    %c0_3 = arith.constant 0 : index
    %c0_4 = arith.constant 0 : index
    %2 = vector.load %arg5[%c0_3, %c0_4] : memref<32x96xf32, #tpu.memory_space<vmem>>, vector<32x96xf32>
    %c0_5 = arith.constant 0 : index
    %c0_6 = arith.constant 0 : index
    %3 = vector.load %arg6[%c0_5, %c0_6] : memref<1x96xf32, #tpu.memory_space<vmem>>, vector<1x96xf32>
    %cst = arith.constant 0.000000e+00 : f32
    %4 = vector.broadcast %cst : f32 to vector<4x32xf32>
    %c0_i32 = arith.constant 0 : i32
    %c8_i32 = arith.constant 8 : i32
    %5 = arith.addi %c0_i32, %c8_i32 : i32
    %c1_i32 = arith.constant 1 : i32
    %6 = scf.for %arg8 = %c0_i32 to %5 step %c1_i32 iter_args(%arg9 = %4) -> (vector<4x32xf32>)  : i32 {
      %c0_i32_8 = arith.constant 0 : i32
      %cst_9 = arith.constant dense<0.000000e+00> : vector<4x64xf32>
      %7 = tpu.matmul %arg9, %0, %cst_9 {dimension_numbers = #tpu.dot_dimension_numbers<[1], [0], [0], [1], [0, 0, 1, 1], [], []>} : vector<4x32xf32>, vector<32x64xf32>, vector<4x64xf32> -> vector<4x64xf32>
      %8 = arith.negf %7 : vector<4x64xf32>
      %9 = math.exp %8 : vector<4x64xf32>
      %cst_10 = arith.constant 1.000000e+00 : f32
      %10 = vector.broadcast %cst_10 : f32 to vector<4x64xf32>
      %11 = arith.addf %10, %9 : vector<4x64xf32>
      %12 = arith.divf %10, %11 : vector<4x64xf32>
      %13 = vector.extract_strided_slice %12 {offsets = [0, 0], sizes = [4, 32], strides = [1, 1]} : vector<4x64xf32> to vector<4x32xf32>
      %14 = vector.extract_strided_slice %12 {offsets = [0, 32], sizes = [4, 32], strides = [1, 1]} : vector<4x64xf32> to vector<4x32xf32>
      %15 = arith.mulf %13, %arg9 : vector<4x32xf32>
      %cst_11 = arith.constant dense<0.000000e+00> : vector<4x32xf32>
      %16 = tpu.matmul %15, %1, %cst_11 {dimension_numbers = #tpu.dot_dimension_numbers<[1], [0], [0], [1], [0, 0, 1, 1], [], []>} : vector<4x32xf32>, vector<32x32xf32>, vector<4x32xf32> -> vector<4x32xf32>
      %17 = math.tanh %16 : vector<4x32xf32>
      %cst_12 = arith.constant 1.000000e+00 : f32
      %18 = vector.broadcast %cst_12 : f32 to vector<4x32xf32>
      %19 = arith.subf %18, %14 : vector<4x32xf32>
      %cst_13 = arith.constant 2.500000e-01 : f32
      %20 = vector.broadcast %cst_13 : f32 to vector<4x32xf32>
      %21 = arith.mulf %20, %19 : vector<4x32xf32>
      %22 = arith.subf %17, %arg9 : vector<4x32xf32>
      %23 = arith.mulf %21, %22 : vector<4x32xf32>
      %24 = arith.addf %arg9, %23 : vector<4x32xf32>
      %c1_i32_14 = arith.constant 1 : i32
      %cst_15 = arith.constant dense<0.000000e+00> : vector<4x64xf32>
      %25 = tpu.matmul %24, %0, %cst_15 {dimension_numbers = #tpu.dot_dimension_numbers<[1], [0], [0], [1], [0, 0, 1, 1], [], []>} : vector<4x32xf32>, vector<32x64xf32>, vector<4x64xf32> -> vector<4x64xf32>
      %26 = arith.negf %25 : vector<4x64xf32>
      %27 = math.exp %26 : vector<4x64xf32>
      %cst_16 = arith.constant 1.000000e+00 : f32
      %28 = vector.broadcast %cst_16 : f32 to vector<4x64xf32>
      %29 = arith.addf %28, %27 : vector<4x64xf32>
      %30 = arith.divf %28, %29 : vector<4x64xf32>
      %31 = vector.extract_strided_slice %30 {offsets = [0, 0], sizes = [4, 32], strides = [1, 1]} : vector<4x64xf32> to vector<4x32xf32>
      %32 = vector.extract_strided_slice %30 {offsets = [0, 32], sizes = [4, 32], strides = [1, 1]} : vector<4x64xf32> to vector<4x32xf32>
      %33 = arith.mulf %31, %24 : vector<4x32xf32>
      %cst_17 = arith.constant dense<0.000000e+00> : vector<4x32xf32>
      %34 = tpu.matmul %33, %1, %cst_17 {dimension_numbers = #tpu.dot_dimension_numbers<[1], [0], [0], [1], [0, 0, 1, 1], [], []>} : vector<4x32xf32>, vector<32x32xf32>, vector<4x32xf32> -> vector<4x32xf32>
      %35 = math.tanh %34 : vector<4x32xf32>
      %cst_18 = arith.constant 1.000000e+00 : f32
      %36 = vector.broadcast %cst_18 : f32 to vector<4x32xf32>
      %37 = arith.subf %36, %32 : vector<4x32xf32>
      %cst_19 = arith.constant 2.500000e-01 : f32
      %38 = vector.broadcast %cst_19 : f32 to vector<4x32xf32>
      %39 = arith.mulf %38, %37 : vector<4x32xf32>
      %40 = arith.subf %35, %24 : vector<4x32xf32>
      %41 = arith.mulf %39, %40 : vector<4x32xf32>
      %42 = arith.addf %24, %41 : vector<4x32xf32>
      %c2_i32 = arith.constant 2 : i32
      %cst_20 = arith.constant dense<0.000000e+00> : vector<4x64xf32>
      %43 = tpu.matmul %42, %0, %cst_20 {dimension_numbers = #tpu.dot_dimension_numbers<[1], [0], [0], [1], [0, 0, 1, 1], [], []>} : vector<4x32xf32>, vector<32x64xf32>, vector<4x64xf32> -> vector<4x64xf32>
      %44 = arith.negf %43 : vector<4x64xf32>
      %45 = math.exp %44 : vector<4x64xf32>
      %cst_21 = arith.constant 1.000000e+00 : f32
      %46 = vector.broadcast %cst_21 : f32 to vector<4x64xf32>
      %47 = arith.addf %46, %45 : vector<4x64xf32>
      %48 = arith.divf %46, %47 : vector<4x64xf32>
      %49 = vector.extract_strided_slice %48 {offsets = [0, 0], sizes = [4, 32], strides = [1, 1]} : vector<4x64xf32> to vector<4x32xf32>
      %50 = vector.extract_strided_slice %48 {offsets = [0, 32], sizes = [4, 32], strides = [1, 1]} : vector<4x64xf32> to vector<4x32xf32>
      %51 = arith.mulf %49, %42 : vector<4x32xf32>
      %cst_22 = arith.constant dense<0.000000e+00> : vector<4x32xf32>
      %52 = tpu.matmul %51, %1, %cst_22 {dimension_numbers = #tpu.dot_dimension_numbers<[1], [0], [0], [1], [0, 0, 1, 1], [], []>} : vector<4x32xf32>, vector<32x32xf32>, vector<4x32xf32> -> vector<4x32xf32>
      %53 = math.tanh %52 : vector<4x32xf32>
      %cst_23 = arith.constant 1.000000e+00 : f32
      %54 = vector.broadcast %cst_23 : f32 to vector<4x32xf32>
      %55 = arith.subf %54, %50 : vector<4x32xf32>
      %cst_24 = arith.constant 2.500000e-01 : f32
      %56 = vector.broadcast %cst_24 : f32 to vector<4x32xf32>
      %57 = arith.mulf %56, %55 : vector<4x32xf32>
      %58 = arith.subf %53, %42 : vector<4x32xf32>
      %59 = arith.mulf %57, %58 : vector<4x32xf32>
      %60 = arith.addf %42, %59 : vector<4x32xf32>
      %c3_i32 = arith.constant 3 : i32
      %cst_25 = arith.constant dense<0.000000e+00> : vector<4x64xf32>
      %61 = tpu.matmul %60, %0, %cst_25 {dimension_numbers = #tpu.dot_dimension_numbers<[1], [0], [0], [1], [0, 0, 1, 1], [], []>} : vector<4x32xf32>, vector<32x64xf32>, vector<4x64xf32> -> vector<4x64xf32>
      %62 = arith.negf %61 : vector<4x64xf32>
      %63 = math.exp %62 : vector<4x64xf32>
      %cst_26 = arith.constant 1.000000e+00 : f32
      %64 = vector.broadcast %cst_26 : f32 to vector<4x64xf32>
      %65 = arith.addf %64, %63 : vector<4x64xf32>
      %66 = arith.divf %64, %65 : vector<4x64xf32>
      %67 = vector.extract_strided_slice %66 {offsets = [0, 0], sizes = [4, 32], strides = [1, 1]} : vector<4x64xf32> to vector<4x32xf32>
      %68 = vector.extract_strided_slice %66 {offsets = [0, 32], sizes = [4, 32], strides = [1, 1]} : vector<4x64xf32> to vector<4x32xf32>
      %69 = arith.mulf %67, %60 : vector<4x32xf32>
      %cst_27 = arith.constant dense<0.000000e+00> : vector<4x32xf32>
      %70 = tpu.matmul %69, %1, %cst_27 {dimension_numbers = #tpu.dot_dimension_numbers<[1], [0], [0], [1], [0, 0, 1, 1], [], []>} : vector<4x32xf32>, vector<32x32xf32>, vector<4x32xf32> -> vector<4x32xf32>
      %71 = math.tanh %70 : vector<4x32xf32>
      %cst_28 = arith.constant 1.000000e+00 : f32
      %72 = vector.broadcast %cst_28 : f32 to vector<4x32xf32>
      %73 = arith.subf %72, %68 : vector<4x32xf32>
      %cst_29 = arith.constant 2.500000e-01 : f32
      %74 = vector.broadcast %cst_29 : f32 to vector<4x32xf32>
      %75 = arith.mulf %74, %73 : vector<4x32xf32>
      %76 = arith.subf %71, %60 : vector<4x32xf32>
      %77 = arith.mulf %75, %76 : vector<4x32xf32>
      %78 = arith.addf %60, %77 : vector<4x32xf32>
      %79 = arith.index_cast %arg8 : i32 to index
      %c0_30 = arith.constant 0 : index
      %c0_31 = arith.constant 0 : index
      %80 = vector.load %arg2[%79, %c0_30, %c0_31] : memref<8x4x96xf32, #tpu.memory_space<vmem>>, vector<1x4x96xf32>
      %81 = vector.shape_cast %80 : vector<1x4x96xf32> to vector<4x96xf32>
      %cst_32 = arith.constant dense<0.000000e+00> : vector<4x96xf32>
      %82 = tpu.matmul %78, %2, %cst_32 {dimension_numbers = #tpu.dot_dimension_numbers<[1], [0], [0], [1], [0, 0, 1, 1], [], []>} : vector<4x32xf32>, vector<32x96xf32>, vector<4x96xf32> -> vector<4x96xf32>
      %83 = vector.broadcast %3 : vector<1x96xf32> to vector<4x96xf32>
      %84 = arith.addf %82, %83 : vector<4x96xf32>
      %85 = vector.extract_strided_slice %81 {offsets = [0, 0], sizes = [4, 32], strides = [1, 1]} : vector<4x96xf32> to vector<4x32xf32>
      %86 = vector.extract_strided_slice %84 {offsets = [0, 0], sizes = [4, 32], strides = [1, 1]} : vector<4x96xf32> to vector<4x32xf32>
      %87 = arith.addf %85, %86 : vector<4x32xf32>
      %88 = arith.negf %87 : vector<4x32xf32>
      %89 = math.exp %88 : vector<4x32xf32>
      %cst_33 = arith.constant 1.000000e+00 : f32
      %90 = vector.broadcast %cst_33 : f32 to vector<4x32xf32>
      %91 = arith.addf %90, %89 : vector<4x32xf32>
      %92 = arith.divf %90, %91 : vector<4x32xf32>
      %93 = vector.extract_strided_slice %81 {offsets = [0, 32], sizes = [4, 32], strides = [1, 1]} : vector<4x96xf32> to vector<4x32xf32>
      %94 = vector.extract_strided_slice %84 {offsets = [0, 32], sizes = [4, 32], strides = [1, 1]} : vector<4x96xf32> to vector<4x32xf32>
      %95 = arith.addf %93, %94 : vector<4x32xf32>
      %96 = arith.negf %95 : vector<4x32xf32>
      %97 = math.exp %96 : vector<4x32xf32>
      %cst_34 = arith.constant 1.000000e+00 : f32
      %98 = vector.broadcast %cst_34 : f32 to vector<4x32xf32>
      %99 = arith.addf %98, %97 : vector<4x32xf32>
      %100 = arith.divf %98, %99 : vector<4x32xf32>
      %101 = vector.extract_strided_slice %81 {offsets = [0, 64], sizes = [4, 32], strides = [1, 1]} : vector<4x96xf32> to vector<4x32xf32>
      %102 = vector.extract_strided_slice %84 {offsets = [0, 64], sizes = [4, 32], strides = [1, 1]} : vector<4x96xf32> to vector<4x32xf32>
      %103 = arith.mulf %92, %102 : vector<4x32xf32>
      %104 = arith.addf %101, %103 : vector<4x32xf32>
      %105 = math.tanh %104 : vector<4x32xf32>
      %cst_35 = arith.constant 1.000000e+00 : f32
      %106 = vector.broadcast %cst_35 : f32 to vector<4x32xf32>
      %107 = arith.subf %106, %100 : vector<4x32xf32>
      %108 = arith.mulf %107, %105 : vector<4x32xf32>
      %109 = arith.mulf %100, %78 : vector<4x32xf32>
      %110 = arith.addf %108, %109 : vector<4x32xf32>
      %111 = arith.index_cast %arg8 : i32 to index
      %c0_36 = arith.constant 0 : index
      %c0_37 = arith.constant 0 : index
      %112 = vector.load %arg7[%111, %c0_36, %c0_37] : memref<8x4x32xf32, #tpu.memory_space<vmem>>, vector<1x4x32xf32>
      %113 = vector.shape_cast %112 : vector<1x4x32xf32> to vector<4x32xf32>
      %114 = vector.shape_cast %110 : vector<4x32xf32> to vector<1x4x32xf32>
      tpu.vector_store %arg7[%111, %c0_36, %c0_37], %114 {strides = array<i32>} : memref<8x4x32xf32, #tpu.memory_space<vmem>>, vector<1x4x32xf32>,
      scf.yield %110 : vector<4x32xf32>
    }
    %c8_i32_7 = arith.constant 8 : i32
    return
  }
  func.func @transform_0(%arg0: i32, %arg1: memref<8xi32, #tpu.memory_space<smem>>) -> (i32, i32, i32) {
    %c0_i32 = arith.constant 0 : i32
    %c0_i32_0 = arith.constant 0 : i32
    %c0_i32_1 = arith.constant 0 : i32
    return %c0_i32, %arg0, %c0_i32_0 : i32, i32, i32
  }
  func.func @transform_1(%arg0: i32, %arg1: memref<8xi32, #tpu.memory_space<smem>>) -> (i32, i32) {
    %c0_i32 = arith.constant 0 : i32
    %c0_i32_0 = arith.constant 0 : i32
    %c0_i32_1 = arith.constant 0 : i32
    return %c0_i32, %c0_i32_0 : i32, i32
  }
  func.func @transform_2(%arg0: i32, %arg1: memref<8xi32, #tpu.memory_space<smem>>) -> (i32, i32) {
    %c0_i32 = arith.constant 0 : i32
    %c0_i32_0 = arith.constant 0 : i32
    %c0_i32_1 = arith.constant 0 : i32
    return %c0_i32, %c0_i32_0 : i32, i32
  }
  func.func @transform_3(%arg0: i32, %arg1: memref<8xi32, #tpu.memory_space<smem>>) -> (i32, i32) {
    %c0_i32 = arith.constant 0 : i32
    %c0_i32_0 = arith.constant 0 : i32
    %c0_i32_1 = arith.constant 0 : i32
    return %c0_i32, %c0_i32_0 : i32, i32
  }
  func.func @transform_4(%arg0: i32, %arg1: memref<8xi32, #tpu.memory_space<smem>>) -> (i32, i32) {
    %c0_i32 = arith.constant 0 : i32
    %c0_i32_0 = arith.constant 0 : i32
    %c0_i32_1 = arith.constant 0 : i32
    return %c0_i32, %c0_i32_0 : i32, i32
  }
  func.func @transform_5(%arg0: i32, %arg1: memref<8xi32, #tpu.memory_space<smem>>) -> (i32, i32, i32) {
    %c0_i32 = arith.constant 0 : i32
    %c0_i32_0 = arith.constant 0 : i32
    %c0_i32_1 = arith.constant 0 : i32
    return %c0_i32, %arg0, %c0_i32_0 : i32, i32, i32
  }
}

</mosaic_0001>

<bundles_post_ra>
// kernel: tpu_custom_call.1
= control target key start
LH: loop header
LB: loop body
LE: loop exit
PB: predicated region body
PF: predicated region fallthrough
CT: control target
= control target key end

     0   :  { %s772_s24 = smov [#allocation3]   ;;  %s952_s0 = inlined_call_operand.hbm [shape: s32[8], index: 0, kind: input, shape index: {}]   ;;  %s953_s1 = inlined_call_operand.hbm [shape: f32[8,4,96], index: 1, kind: input, shape index: {}]   ;;  %s954_s2 = inlined_call_operand.hbm [shape: f32[32,64], index: 2, kind: input, shape index: {}]   ;;  %s955_s3 = inlined_call_operand.hbm [shape: f32[32,32], index: 3, kind: input, shape index: {}]   ;;  %s956_s4 = inlined_call_operand.hbm [shape: f32[32,96], index: 4, kind: input, shape index: {}]   ;;  %s957_s5 = inlined_call_operand.vmem [shape: f32[1,96], index: 5, kind: input, shape index: {}]   ;;  %s958_s6 = inlined_call_operand.hbm [shape: f32[8,4,32], index: 6, kind: output, shape index: {}]  }
   0x1   :  { %s12_s23 = sshll.u32 %s952_s0, 4  ;;  %s13_s23 = int_to_ptr.hbm [resolvable:$true] %s12_s23 }
   0x2   :  { %15 = dma.hbm_to_smem %s13_s23, 16, %s772_s24, [#allocation2] }
   0x3   :  { %754 = dma.done.wait [#allocation2], 16 }
   0x4   :  { %755 = vsyncadd [#allocation2], 4294967280 }
   0x5   :  { %18 = sfence }
   0x6   :  { %19 = vsyncpa [#allocation5], 0 }
   0x7   :  { %20 = vsyncpa [#allocation8], 0 }
   0x8   :  { %21 = vsyncpa [#allocation11], 0  ;;  %s40_s27 = sshll.u32 %s954_s2, 4  ;;  %s41_s27 = int_to_ptr.hbm [resolvable:$true] %s40_s27 }
   0x9   :  { %22 = vsyncpa [#allocation6], 0  ;;  %s773_s28 = smov [#allocation7]   ;;  %s27_s7 = sshll.u32 %s953_s1, 4  ;;  %s28_s7 = int_to_ptr.hbm [resolvable:$true] %s27_s7 }
   0xa   :  { %s42_s29 = sshll.u32 %s773_s28, 4  ;;  %s774_s8 = smov 128   ;;  %s43_s29 = int_to_ptr.vmem [resolvable:$true] %s42_s29 }
   0xb   :  { %s775_s9 = smov 8   ;;  %s776_s10 = smov [#allocation4]  }
   0xc   :  { %48 = dma.hbm_to_vmem [thread:$0]  %s41_s27, 512, %s43_s29, [#allocation8], %s774_s8, %s774_s8, %s775_s9  }
   0xd   :  { %s29_s11 = sshll.u32 %s776_s10, 4  ;;  %s777_s12 = smov 64   ;;  %s30_s11 = int_to_ptr.vmem [resolvable:$true] %s29_s11 }
   0xe   :  { %s778_s13 = smov 4   ;;  %s53_s15 = sshll.u32 %s955_s3, 4  ;;  %s54_s15 = int_to_ptr.hbm [resolvable:$true] %s53_s15 }
   0xf   :  { %35 = dma.hbm_to_vmem [thread:$0]  %s28_s7, 512, %s30_s11, [#allocation5], %s777_s12, %s777_s12, %s778_s13  }
  0x10   :  { %s779_s16 = smov [#allocation9]   ;;  %s66_s19 = sshll.u32 %s956_s4, 4  ;;  %s67_s19 = int_to_ptr.hbm [resolvable:$true] %s66_s19 }
  0x11   :  { %s55_s1 = sshll.u32 %s779_s16, 4  ;;  %s780_s20 = smov [#allocation10]   ;;  %s56_s1 = int_to_ptr.vmem [resolvable:$true] %s55_s1 }
  0x12   :  { %61 = dma.hbm_to_vmem [thread:$0]  %s54_s15, 512, %s56_s1, [#allocation8], %s774_s8, %s774_s8, %s775_s9  }
  0x13   :  { %s68_s21 = sshll.u32 %s780_s20, 4  ;;  %s69_s21 = int_to_ptr.vmem [resolvable:$true] %s68_s21 }
  0x14   :  { %74 = dma.hbm_to_vmem [thread:$0]  %s67_s19, 512, %s69_s21, [#allocation11], %s774_s8, %s774_s8, %s775_s9  }
  0x15   :  { %756 = dma.done.wait [#allocation5], 512  }
  0x16   :  { %757 = vsyncadd [#allocation5], 4294966784 }
  0x17   :  { %758 = dma.done.wait [#allocation8], 1024  }
  0x18   :  { %759 = vsyncadd [#allocation8], 4294966272 }
  0x19   :  { %760 = dma.done.wait [#allocation11], 512  }
  0x1a   :  { %761 = vsyncadd [#allocation11], 4294966784  ;;  %v838_v0 = vld [vmem:[#allocation7] sm:$0xff]  ;;  %v840_v1 = vld [vmem:[#allocation7 + $0x8] sm:$0xff]  ;;  %v867_v13 = vmov 0.0   ;;  %s869_s22 = smov 0  }
  0x1b   :  { %v842_v2 = vld [vmem:[#allocation7 + $0x10] sm:$0xff]  ;;  %v844_v3 = vld [vmem:[#allocation7 + $0x18] sm:$0xff]  ;;  %v846_v4 = vld [vmem:[#allocation9] sm:$0xff] }
  0x1c   :  { %v848_v5 = vld [vmem:[#allocation9 + $0x8] sm:$0xff]  ;;  %v850_v6 = vld [vmem:[#allocation9 + $0x10] sm:$0xff]  ;;  %v852_v7 = vld [vmem:[#allocation9 + $0x18] sm:$0xff] }
  0x1d   :  { %v854_v8 = vld [vmem:[#allocation10] sm:$0xff]  ;;  %v856_v9 = vld [vmem:[#allocation10 + $0x8] sm:$0xff]  ;;  %v858_v10 = vld [vmem:[#allocation10 + $0x10] sm:$0xff] }
  0x1e   :  { %v860_v11 = vld [vmem:[#allocation10 + $0x18] sm:$0xff]  ;;  %v865_v12 = vld [vmem:[%s957_s5] sm:$0x1] }
  0x1f LB: > { %131 = vmatpush.msra.mxu0 %v844_v3  ;;  %175 = vmatpush.msra.mxu1 %v852_v7  ;;  %s781_s5 = smov 96   ;;  %vm116_vm0 = vcmask 261120   ;;  %s782_s23 = smov 32   ;;  %s770_s22 = sphi %s869_s22, %s111_s22   ;;  %v766_v13 = vphi %v867_v13, %v499_v13  }
  0x20   : > { %210 = vmatpush.msra.mxu2 %v844_v3  ;;  %254 = vmatpush.msra.mxu3 %v852_v7  ;;  %s783_s24 = smov 64   ;;  %s552_s25 = sshll.u32 %s770_s22, 2 }
  0x21   : > { %114 = vrot.lane.b32.xlu0 %v766_v13, %s781_s5  ;;  %132 = vmatpush.msra.mxu0 %v842_v2  ;;  %s431_s26 = scalar_lea.vmem [#allocation4], %s552_s25  ;;  %s504_s27 = scalar_lea.vmem [#allocation12], %s552_s25 }
  0x22   : > { %176 = vmatpush.msra.mxu1 %v850_v6  ;;  %211 = vmatpush.msra.mxu2 %v842_v2  ;;  %s111_s22 = sadd.s32 1, %s770_s22  }
  0x23   : > { %133 = vmatpush.msra.mxu0 %v840_v1  ;;  %255 = vmatpush.msra.mxu3 %v850_v6  ;;  %p108_p0 = scmp.ge.s32.totalorder %s111_s22, 8  }
  0x24   : > { %177 = vmatpush.msra.mxu1 %v848_v5  ;;  %212 = vmatpush.msra.mxu2 %v840_v1  ;;  %s513_s30 = sshll.u32 (%p108_p0), %s958_s6, 4  ;;  %s784_s0 = smov (%p108_p0), [#allocation12]   ;;  %s514_s30 = int_to_ptr.hbm [resolvable:$true] %s513_s30 }
  0x25   : > { %134 = vmatpush.msra.mxu0 %v838_v0  ;;  %256 = vmatpush.msra.mxu3 %v848_v5  ;;  %s511_s7 = sshll.u32 (%p108_p0), %s784_s0, 4  ;;  %s512_s7 = int_to_ptr.vmem [resolvable:$true] %s511_s7 }
  0x26   : > { %178 = vmatpush.msra.mxu1 %v846_v4  ;;  %213 = vmatpush.msra.mxu2 %v838_v0 }
  0x27   : > { %257 = vmatpush.msra.mxu3 %v846_v4  ;;  %289 = vmatpush.msrb.mxu0 %v844_v3 }
  0x28   : > { %333 = vmatpush.msrb.mxu1 %v852_v7  ;;  %368 = vmatpush.msrb.mxu2 %v844_v3 }
  0x29   : > { %290 = vmatpush.msrb.mxu0 %v842_v2  ;;  %412 = vmatpush.msrb.mxu3 %v852_v7 }
  0x2a   : > { %334 = vmatpush.msrb.mxu1 %v850_v6  ;;  %369 = vmatpush.msrb.mxu2 %v842_v2 }
  0x2b   : > { %291 = vmatpush.msrb.mxu0 %v840_v1  ;;  %413 = vmatpush.msrb.mxu3 %v850_v6 }
  0x2c   : > { %335 = vmatpush.msrb.mxu1 %v848_v5  ;;  %370 = vmatpush.msrb.mxu2 %v840_v1 }
  0x2d   : > { %292 = vmatpush.msrb.mxu0 %v838_v0  ;;  %414 = vmatpush.msrb.mxu3 %v848_v5 }
  0x2e   : > { %336 = vmatpush.msrb.mxu1 %v846_v4  ;;  %371 = vmatpush.msrb.mxu2 %v838_v0 }
  0x2f   : > { %415 = vmatpush.msrb.mxu3 %v846_v4 }
  0x93   : > { %v115_v14 = vpop.permute.xlu0 %114 }
  0x94   : > { %540 = vmatmul.msk.f32.vlgmr.msra.gmra.mxu0 %vm116_vm0, %v115_v14 }
  0x95   : > { %453 = vmatpush.msra.mxu0 %v860_v11 }
  0x97   : > { %454 = vmatpush.msra.mxu0 %v858_v10 }
  0x99   : > { %455 = vmatpush.msra.mxu0 %v856_v9 }
  0x9b   : > { %456 = vmatpush.msra.mxu0 %v854_v8 }
 0x111   : > { %v136_v15 = vpop.f32.mrf.mxu0 }
 0x112   : > { %v541_v16 = vmul.f32 -1.442695, %v136_v15 }
 0x114   : > { %584 = vpow2.f32 %v541_v16 }
 0x11a   : > { %v585_v17 = vpop.eup %584 }
 0x11b   : > { %v142_v18 = vadd.f32 1.0, %v585_v17 }
 0x11d   : > { %586 = vrcp.f32 %v142_v18  ;;  %v154_v22 = vand.u32 2147483648, %v142_v18  ;;  %v152_v24 = vand.u32 2147483647, %v142_v18  ;;  %vm148_vm2 = vweird.f32 %v142_v18 }
 0x11f   : > { %v155_v26 = vor.u32 1.1754944e-38, %v154_v22  ;;  %vm153_vm4 = vcmp.eq.f32.partialorder %v152_v24, 8.507059e+37 }
 0x123   : > { %v587_v19 = vpop.eup %586 }
 0x124   : > { %v144_v20 = vmul.f32 %v587_v19, %v142_v18  ;;  %vm149_vm1 = vweird.f32 %v587_v19 }
 0x125   : > { %vm150_vm3 = vmor %vm148_vm2, %vm149_vm1 }
 0x126   : > { %v145_v21 = vsub.f32 1.0, %v144_v20 }
 0x128   : > { %v146_v23 = vmul.f32 %v587_v19, %v145_v21 }
 0x12a   : > { %v147_v25 = vadd.f32 %v587_v19, %v146_v23 }
 0x12c   : > { %v151_v27 = vsel %vm150_vm3, %v587_v19, %v147_v25 }
 0x12d   : > { %v156_v28 = vsel %vm153_vm4, %v155_v26, %v151_v27 }
 0x12e   : > { %v159_v29 = vmul.f32 %v156_v28, %v115_v14  ;;  %v184_v33 = vsub.f32 1.0, %v156_v28 }
 0x130   : > { %542 = vmatmul.msk.f32.vlgmr.msra.gmra.mxu1 %vm116_vm0, %v159_v29  ;;  %v185_v34 = vmul.f32 0.25, %v184_v33 }
 0x1ad   : > { %v180_v30 = vpop.f32.mrf.mxu1 }
 0x1ae   : > { %588 = vtanh.f32 %v180_v30 }
 0x1b4   : > { %v589_v31 = vpop.eup %588 }
 0x1b5   : > { %v186_v32 = vsub.f32 %v589_v31, %v115_v14 }
 0x1b7   : > { %188 = vrot.lane.b32.xlu0 %v186_v32, %s782_s23 }
 0x229   : > { %v189_v35 = vpop.permute.xlu0 %188 }
 0x22a   : > { %v191_v36 = vmul.f32 %v189_v35, %v185_v34 }
 0x22c   : > { %v192_v37 = vadd.f32 %v766_v13, %v191_v36 }
 0x22e   : > { %194 = vrot.lane.b32.xlu1 %v192_v37, %s781_s5 }
 0x2a0   : > { %v195_v38 = vpop.permute.xlu1 %194 }
 0x2a1   : > { %543 = vmatmul.msk.f32.vlgmr.msra.gmra.mxu2 %vm116_vm0, %v195_v38 }
 0x324   : > { %v215_v39 = vpop.f32.mrf.mxu2 }
 0x325   : > { %v544_v40 = vmul.f32 -1.442695, %v215_v39 }
 0x327   : > { %590 = vpow2.f32 %v544_v40 }
 0x32d   : > { %v591_v41 = vpop.eup %590 }
 0x32e   : > { %v221_v42 = vadd.f32 1.0, %v591_v41 }
 0x330   : > { %592 = vrcp.f32 %v221_v42  ;;  %v233_v46 = vand.u32 2147483648, %v221_v42  ;;  %v231_v48 = vand.u32 2147483647, %v221_v42  ;;  %vm227_vm6 = vweird.f32 %v221_v42 }
 0x332   : > { %v234_v50 = vor.u32 1.1754944e-38, %v233_v46  ;;  %vm232_vm8 = vcmp.eq.f32.partialorder %v231_v48, 8.507059e+37 }
 0x336   : > { %v593_v43 = vpop.eup %592 }
 0x337   : > { %v223_v44 = vmul.f32 %v593_v43, %v221_v42  ;;  %vm228_vm5 = vweird.f32 %v593_v43 }
 0x338   : > { %vm229_vm7 = vmor %vm227_vm6, %vm228_vm5  ;;  %vm505_vm5 = vcmask 257024  }
 0x339   : > { %v224_v45 = vsub.f32 1.0, %v223_v44 }
 0x33b   : > { %v225_v47 = vmul.f32 %v593_v43, %v224_v45 }
 0x33d   : > { %v226_v49 = vadd.f32 %v593_v43, %v225_v47 }
 0x33f   : > { %v230_v51 = vsel %vm229_vm7, %v593_v43, %v226_v49 }
 0x340   : > { %v235_v52 = vsel %vm232_vm8, %v234_v50, %v230_v51 }
 0x341   : > { %v238_v53 = vmul.f32 %v235_v52, %v195_v38  ;;  %v263_v57 = vsub.f32 1.0, %v235_v52 }
 0x343   : > { %545 = vmatmul.msk.f32.vlgmr.msra.gmra.mxu3 %vm116_vm0, %v238_v53  ;;  %v264_v58 = vmul.f32 0.25, %v263_v57 }
 0x3c6   : > { %v259_v54 = vpop.f32.mrf.mxu3 }
 0x3c7   : > { %594 = vtanh.f32 %v259_v54 }
 0x3cd   : > { %v595_v55 = vpop.eup %594 }
 0x3ce   : > { %v265_v56 = vsub.f32 %v595_v55, %v195_v38 }
 0x3d0   : > { %267 = vrot.lane.b32.xlu1 %v265_v56, %s782_s23 }
 0x442   : > { %v268_v59 = vpop.permute.xlu1 %267 }
 0x443   : > { %v270_v60 = vmul.f32 %v268_v59, %v264_v58 }
 0x445   : > { %v271_v61 = vadd.f32 %v270_v60, %v192_v37  ;;  %v434_v60 = vperm.slane %v865_v12, 0 }
 0x447   : > { %273 = vrot.lane.b32.xlu2 %v271_v61, %s781_s5 }
 0x4a1   : > { %v274_v62 = vpop.permute.xlu2 %273 }
 0x4a2   : > { %546 = vmatmul.msk.f32.vlgmr.msrb.gmra.mxu0 %vm116_vm0, %v274_v62 }
 0x51f   : > { %v294_v63 = vpop.f32.mrf.mxu0 }
 0x520   : > { %v547_v13 = vmul.f32 -1.442695, %v294_v63  ;;  %v432_v63 = vld [vmem:[%s431_s26] sm:$0xf] }
 0x522   : > { %596 = vpow2.f32 %v547_v13 }
 0x528   : > { %v597_v14 = vpop.eup %596 }
 0x529   : > { %v300_v15 = vadd.f32 1.0, %v597_v14 }
 0x52b   : > { %598 = vrcp.f32 %v300_v15  ;;  %v312_v19 = vand.u32 2147483648, %v300_v15  ;;  %v310_v21 = vand.u32 2147483647, %v300_v15  ;;  %vm306_vm10 = vweird.f32 %v300_v15 }
 0x52d   : > { %v313_v23 = vor.u32 1.1754944e-38, %v312_v19  ;;  %vm311_vm12 = vcmp.eq.f32.partialorder %v310_v21, 8.507059e+37 }
 0x531   : > { %v599_v16 = vpop.eup %598 }
 0x532   : > { %v302_v17 = vmul.f32 %v599_v16, %v300_v15  ;;  %vm307_vm9 = vweird.f32 %v599_v16 }
 0x533   : > { %vm308_vm11 = vmor %vm306_vm10, %vm307_vm9 }
 0x534   : > { %v303_v18 = vsub.f32 1.0, %v302_v17 }
 0x536   : > { %v304_v20 = vmul.f32 %v599_v16, %v303_v18 }
 0x538   : > { %v305_v22 = vadd.f32 %v599_v16, %v304_v20 }
 0x53a   : > { %v309_v24 = vsel %vm308_vm11, %v599_v16, %v305_v22 }
 0x53b   : > { %v314_v25 = vsel %vm311_vm12, %v313_v23, %v309_v24 }
 0x53c   : > { %v317_v26 = vmul.f32 %v314_v25, %v274_v62  ;;  %v342_v30 = vsub.f32 1.0, %v314_v25 }
 0x53e   : > { %548 = vmatmul.msk.f32.vlgmr.msrb.gmra.mxu1 %vm116_vm0, %v317_v26  ;;  %v343_v31 = vmul.f32 0.25, %v342_v30 }
 0x5bb   : > { %v338_v27 = vpop.f32.mrf.mxu1 }
 0x5bc   : > { %600 = vtanh.f32 %v338_v27 }
 0x5c2   : > { %v601_v28 = vpop.eup %600 }
 0x5c3   : > { %v344_v29 = vsub.f32 %v601_v28, %v274_v62 }
 0x5c5   : > { %346 = vrot.lane.b32.xlu2 %v344_v29, %s782_s23 }
 0x61f   : > { %v347_v32 = vpop.permute.xlu2 %346 }
 0x620   : > { %v349_v33 = vmul.f32 %v347_v32, %v343_v31 }
 0x622   : > { %v350_v34 = vadd.f32 %v349_v33, %v271_v61 }
 0x624   : > { %352 = vrot.lane.b32.xlu0 %v350_v34, %s781_s5 }
 0x696   : > { %v353_v35 = vpop.permute.xlu0 %352 }
 0x697   : > { %549 = vmatmul.msk.f32.vlgmr.msrb.gmra.mxu2 %vm116_vm0, %v353_v35 }
 0x71a   : > { %v373_v36 = vpop.f32.mrf.mxu2 }
 0x71b   : > { %v550_v37 = vmul.f32 -1.442695, %v373_v36 }
 0x71d   : > { %602 = vpow2.f32 %v550_v37 }
 0x723   : > { %v603_v38 = vpop.eup %602 }
 0x724   : > { %v379_v39 = vadd.f32 1.0, %v603_v38 }
 0x726   : > { %604 = vrcp.f32 %v379_v39  ;;  %v391_v43 = vand.u32 2147483648, %v379_v39  ;;  %v389_v45 = vand.u32 2147483647, %v379_v39  ;;  %vm385_vm14 = vweird.f32 %v379_v39 }
 0x728   : > { %v392_v47 = vor.u32 1.1754944e-38, %v391_v43  ;;  %vm390_vm1 = vcmp.eq.f32.partialorder %v389_v45, 8.507059e+37 }
 0x72c   : > { %v605_v40 = vpop.eup %604 }
 0x72d   : > { %v381_v41 = vmul.f32 %v605_v40, %v379_v39  ;;  %vm386_vm13 = vweird.f32 %v605_v40 }
 0x72e   : > { %vm387_vm15 = vmor %vm385_vm14, %vm386_vm13 }
 0x72f   : > { %v382_v42 = vsub.f32 1.0, %v381_v41 }
 0x731   : > { %v383_v44 = vmul.f32 %v605_v40, %v382_v42 }
 0x733   : > { %v384_v46 = vadd.f32 %v605_v40, %v383_v44 }
 0x735   : > { %v388_v48 = vsel %vm387_vm15, %v605_v40, %v384_v46 }
 0x736   : > { %v393_v49 = vsel %vm390_vm1, %v392_v47, %v388_v48 }
 0x737   : > { %v396_v50 = vmul.f32 %v393_v49, %v353_v35  ;;  %v421_v54 = vsub.f32 1.0, %v393_v49 }
 0x739   : > { %551 = vmatmul.msk.f32.vlgmr.msrb.gmra.mxu3 %vm116_vm0, %v396_v50  ;;  %v422_v55 = vmul.f32 0.25, %v421_v54 }
 0x7bc   : > { %v417_v51 = vpop.f32.mrf.mxu3 }
 0x7bd   : > { %606 = vtanh.f32 %v417_v51 }
 0x7c3   : > { %v607_v52 = vpop.eup %606 }
 0x7c4   : > { %v423_v53 = vsub.f32 %v607_v52, %v353_v35 }
 0x7c6   : > { %425 = vrot.lane.b32.xlu1 %v423_v53, %s782_s23 }
 0x838   : > { %v426_v56 = vpop.permute.xlu1 %425 }
 0x839   : > { %v428_v57 = vmul.f32 %v426_v56, %v422_v55 }
 0x83b   : > { %v429_v58 = vadd.f32 %v428_v57, %v350_v34 }
 0x83d   : > { %437 = vrot.lane.b32.xlu2 %v429_v58, %s781_s5 }
 0x897   : > { %v438_v59 = vpop.permute.xlu2 %437 }
 0x898   : > { %553 = vmatmul.msk.f32.vlgmr.msra.gmra.mxu0 %vm116_vm0, %v438_v59 }
 0x915   : > { %v458_v61 = vpop.f32.mrf.mxu0 }
 0x916   : > { %v459_v62 = vadd.f32 %v458_v61, %v434_v60 }
 0x918   : > { %482 = vrot.lane.b32.xlu0 %v459_v62, %s783_s24  ;;  %v461_v13 = vadd.f32 %v459_v62, %v432_v63 }
 0x91a   : > { %v554_v14 = vmul.f32 -1.442695, %v461_v13 }
 0x91c   : > { %608 = vpow2.f32 %v554_v14 }
 0x922   : > { %v609_v15 = vpop.eup %608 }
 0x923   : > { %v465_v16 = vadd.f32 1.0, %v609_v15 }
 0x925   : > { %610 = vrcp.f32 %v465_v16  ;;  %v477_v22 = vand.u32 2147483648, %v465_v16  ;;  %vm471_vm2 = vweird.f32 %v465_v16  ;;  %v475_v23 = vand.u32 2147483647, %v465_v16 }
 0x927   : > { %v478_v25 = vor.u32 1.1754944e-38, %v477_v22  ;;  %vm476_vm4 = vcmp.eq.f32.partialorder %v475_v23, 8.507059e+37 }
 0x92b   : > { %v611_v17 = vpop.eup %610 }
 0x92c   : > { %v467_v18 = vmul.f32 %v611_v17, %v465_v16  ;;  %vm472_vm0 = vweird.f32 %v611_v17 }
 0x92d   : > { %vm473_vm3 = vmor %vm471_vm2, %vm472_vm0 }
 0x92e   : > { %v468_v19 = vsub.f32 1.0, %v467_v18 }
 0x930   : > { %v469_v20 = vmul.f32 %v611_v17, %v468_v19 }
 0x932   : > { %v470_v21 = vadd.f32 %v611_v17, %v469_v20 }
 0x934   : > { %v474_v24 = vsel %vm473_vm3, %v611_v17, %v470_v21 }
 0x935   : > { %v479_v27 = vsel %vm476_vm4, %v478_v25, %v474_v24 }
 0x936   : > { %v492_v32 = vsub.f32 1.0, %v479_v27  ;;  %v498_v34 = vmul.f32 %v479_v27, %v429_v58 }
 0x98a   : > { %v483_v26 = vpop.permute.xlu0 %482 }
 0x98b   : > { %v485_v28 = vmul.f32 %v483_v26, %v479_v27 }
 0x98d   : > { %487 = vrot.lane.b32.xlu1 %v485_v28, %s783_s24 }
 0x9ff   : > { %v488_v29 = vpop.permute.xlu1 %487 }
 0xa00   : > { %v490_v30 = vadd.f32 %v488_v29, %v432_v63 }
 0xa02   : > { %612 = vtanh.f32 %v490_v30 }
 0xa08   : > { %v613_v31 = vpop.eup %612 }
 0xa09   : > { %494 = vrot.lane.b32.xlu2 %v613_v31, %s781_s5 }
 0xa63   : > { %v495_v33 = vpop.permute.xlu2 %494 }
 0xa64   : > { %v497_v35 = vmul.f32 %v495_v33, %v492_v32 }
 0xa66   : > { %v499_v13 = vadd.f32 %v498_v34, %v497_v35  }
 0xa68   : > { %501 = vrot.lane.b32.xlu0 %v499_v13, %s781_s5 }
 0xad7   :  { %110 = sbr.rel (!%p108_p0) target bundleno = 31 (0x1f), region = 65 }
 0xada   : > { %v502_v36 = vpop.permute.xlu0 %501 }
 0xadb   : > { %506 = vst.msk [vmem:[%s504_s27] sm:$0xf] %vm505_vm5, %v502_v36 }
 0xadc   :  { %519 = dma.vmem_to_hbm [thread:$0]  %s512_s7, 512, %s514_s30, [#allocation6], %s777_s12, %s777_s12, %s778_s13  }
 0xadd   :  { %762 = dma.done.wait [#allocation6], 512  }
 0xade   :  { %763 = vsyncadd [#allocation6], 4294966784 }
 0xadf   :  { %524 = vsyncpa [#allocation5], 1 }
 0xae0   :  { %525 = vsyncpa [#allocation8], 1 }
 0xae1   :  { %526 = vsyncpa [#allocation11], 1 }
 0xae2   :  { %527 = vsyncpa [#allocation6], 1 }

</bundles_post_ra>
